<compile_context>
chip_gen: v7x
topology: tpu7x:2x2x1
jax: 0.10.0
libtpu: 0.0.40
codegen_flags: <defaults>
</compile_context>

<pallas_src>
import functools

import jax
import jax.numpy as jnp
from jax.experimental import pallas as pl
from jax.experimental.pallas import tpu as pltpu


_HID = 64
_MAX_BATCH_TILE = 2048   # lanes per grid step (multiple of 128)
_SINGLE_STEP_MAX = 512   # at or below this batch size, one full-array step


def _delta_q_kernel(x_ref, w0_ref, b0_ref, w1_ref, b1_ref,
                    w2_ref, b2_ref, wq_ref, bq_ref, qt_ref):
    """Feature-major forward: every activation tensor is (features, batch_tile)."""
    x = x_ref[...]                                                      # (in_dim, tb)

    # fc0: Linear(4+8, 64) + ReLU, Linear(64, 64) + ReLU   (as W^T @ x)
    h = jnp.dot(w0_ref[...], x, preferred_element_type=jnp.float32) + b0_ref[...]
    h = jnp.maximum(h, 0.0)
    h = jnp.dot(w1_ref[...], h, preferred_element_type=jnp.float32) + b1_ref[...]
    h = jnp.maximum(h, 0.0)

    # TODO(synk): reference forward calls self.fc1, which is never defined in
    # __init__ (bug in the source module); treated as identity here.

    # fc2: Linear(64, obs_dim*2) + ReLU
    h3 = jnp.dot(w2_ref[...], h, preferred_element_type=jnp.float32) + b2_ref[...]
    h3 = jnp.maximum(h3, 0.0)

    # adv/value heads + dueling combine are pre-folded into (wq, bq), so the
    # epilogue is one lane-dense matmul + bias.
    qt_ref[...] = (jnp.dot(wq_ref[...], h3, preferred_element_type=jnp.float32)
                   + bq_ref[...])


def _linear_init(key, fan_in, fan_out):
    """Deterministic init mimicking torch.nn.Linear defaults (U[-1/sqrt(fan_in), ...])."""
    kw, kb = jax.random.split(key)
    bound = 1.0 / jnp.sqrt(jnp.float32(fan_in))
    w = jax.random.uniform(kw, (fan_in, fan_out), jnp.float32, -bound, bound)
    b = jax.random.uniform(kb, (1, fan_out), jnp.float32, -bound, bound)
    return w, b


def make_params(obs_dim, feat_dim, num_actions, seed=0):
    """Torch-layout params: w is (fan_in, fan_out), b is (1, fan_out)."""
    keys = jax.random.split(jax.random.PRNGKey(seed), 5)
    h3_dim = obs_dim * 2                                    # obs_space[0] * 2
    w0, b0 = _linear_init(keys[0], obs_dim + feat_dim, _HID)   # Linear(4+8, 64)
    w1, b1 = _linear_init(keys[1], _HID, _HID)                 # Linear(64, 64)
    w2, b2 = _linear_init(keys[2], _HID, h3_dim)               # Linear(64, obs_dim*2)
    wa, ba = _linear_init(keys[3], h3_dim, num_actions)        # adv head
    wv, bv = _linear_init(keys[4], h3_dim, 1)                  # value head
    return dict(w0=w0, b0=b0, w1=w1, b1=b1, w2=w2, b2=b2,
                wa=wa, ba=ba, wv=wv, bv=bv)


def pack_kernel_params(params):
    """One-time repack for the kernel: transpose weights to feature-major and
    fold the dueling combine  q = V + A - mean(A)  into a single head (wq, bq):
        wq = Wa - mean_col(Wa) + Wv,   bq = ba - mean(ba) + bv .
    """
    wa, ba = params["wa"], params["ba"]
    wv, bv = params["wv"], params["bv"]
    wq = wa - jnp.mean(wa, axis=1, keepdims=True) + wv          # (h3, A)
    bq = ba - jnp.mean(ba, axis=1, keepdims=True) + bv          # (1, A)
    return dict(
        w0t=params["w0"].T, b0t=params["b0"].T,                  # (64, in), (64, 1)
        w1t=params["w1"].T, b1t=params["b1"].T,                  # (64, 64), (64, 1)
        w2t=params["w2"].T, b2t=params["b2"].T,                  # (h3, 64), (h3, 1)
        wqt=wq.T, bqt=bq.T,                                      # (A, h3), (A, 1)
    )


def _round_up(n, m):
    return ((n + m - 1) // m) * m


@functools.partial(jax.jit, static_argnames=("num_actions",))
def delta_q_forward(obs, feat, kparams, num_actions):
    """obs: (B, obs_dim) f32, feat: (B, feat_dim) f32 -> q_values: (B, num_actions) f32."""
    B = obs.shape[0]
    # torch: cat([flatten(obs), flatten(feat)], dim=-1); transposed so the
    # batch lands on the 128-lane axis inside the kernel (lane-dense layout).
    x_t = jnp.concatenate(
        [obs.reshape(B, -1).astype(jnp.float32),
         feat.reshape(B, -1).astype(jnp.float32)], axis=-1).T        # (in_dim, B)
    in_dim = x_t.shape[0]
    hid = kparams["w1t"].shape[0]
    h3_dim = kparams["w2t"].shape[0]
    A = kparams["wqt"].shape[0]

    # Batch tiling on the lane axis: single full-array block for small B;
    # otherwise >= 2 lane-aligned (multiple-of-128) tiles, capped at 2048,
    # so both v7x TensorCores get work and per-step overhead is amortized.
    if B <= _SINGLE_STEP_MAX:
        tb = B
    else:
        tb = min(_MAX_BATCH_TILE, max(128, _round_up(pl.cdiv(B, 2), 128)))
    n_steps = pl.cdiv(B, tb)

    def const(shape):
        # weights/biases: same block every grid step -> DMA'd once, VMEM-resident
        return pl.BlockSpec(shape, lambda i: (0, 0))

    flops = 2 * B * (in_dim * hid + hid * hid + hid * h3_dim + h3_dim * A)
    bytes_accessed = 4 * (int(x_t.size) + B * A
                          + sum(int(v.size) for v in kparams.values()))

    q_t = pl.pallas_call(
        _delta_q_kernel,
        out_shape=jax.ShapeDtypeStruct((A, B), jnp.float32),
        grid=(n_steps,),
        in_specs=[
            pl.BlockSpec((in_dim, tb), lambda i: (0, i)),   # activations: batch on lanes
            const((hid, in_dim)), const((hid, 1)),          # w0^T, b0
            const((hid, hid)), const((hid, 1)),             # w1^T, b1
            const((h3_dim, hid)), const((h3_dim, 1)),       # w2^T, b2
            const((A, h3_dim)), const((A, 1)),              # folded dueling head
        ],
        out_specs=pl.BlockSpec((A, tb), lambda i: (0, i)),
        compiler_params=pltpu.CompilerParams(
            dimension_semantics=("parallel",)),
        cost_estimate=pl.CostEstimate(
            flops=flops, transcendentals=0, bytes_accessed=bytes_accessed),
    )(x_t, kparams["w0t"], kparams["b0t"], kparams["w1t"], kparams["b1t"],
      kparams["w2t"], kparams["b2t"], kparams["wqt"], kparams["bqt"])

    return q_t.T   # (B, num_actions)


if __name__ == "__main__":
    # Module config implied by the forward pass:
    #   flat(obs) has 4 features, flat(feat) has 8 features (Linear(4+8, 64)),
    #   obs_space[0] = 4  ->  fc2 out = 8,  num_actions = 4.
    B, OBS_DIM, FEAT_DIM, NUM_ACTIONS = 2, 4, 8, 4

    key = jax.random.PRNGKey(0)
    k_obs, k_feat = jax.random.split(key)
    obs = jax.random.normal(k_obs, (B, OBS_DIM), jnp.float32)
    feat = jax.random.normal(k_feat, (B, FEAT_DIM), jnp.float32)

    params = make_params(OBS_DIM, FEAT_DIM, NUM_ACTIONS, seed=0)
    kparams = pack_kernel_params(params)

    q_values = delta_q_forward(obs, feat, kparams, NUM_ACTIONS)
    jax.block_until_ready(q_values)
    assert q_values.shape == (B, NUM_ACTIONS), q_values.shape

    # pure-JAX reference of the original (batch-major, unfolded) forward
    x = jnp.concatenate([obs.reshape(B, -1), feat.reshape(B, -1)], axis=-1)
    h = jax.nn.relu(x @ params["w0"] + params["b0"])
    h = jax.nn.relu(h @ params["w1"] + params["b1"])
    h3 = jax.nn.relu(h @ params["w2"] + params["b2"])
    adv = h3 @ params["wa"] + params["ba"]
    val = h3 @ params["wv"] + params["bv"]
    q_expected = val + adv - jnp.mean(adv, axis=-1, keepdims=True)
    assert jnp.allclose(q_values, q_expected, atol=1e-4, rtol=1e-4), (
        q_values, q_expected)

    print("KERNEL_OK")
</pallas_src>

<mosaic_0001>
module attributes {stable_mosaic.version = 11 : i64} {
  func.func @_delta_q_kernel(%arg0: i32, %arg1: memref<12x2xf32, #tpu.memory_space<vmem>>, %arg2: memref<64x12xf32, #tpu.memory_space<vmem>>, %arg3: memref<64x1xf32, #tpu.memory_space<vmem>>, %arg4: memref<64x64xf32, #tpu.memory_space<vmem>>, %arg5: memref<64x1xf32, #tpu.memory_space<vmem>>, %arg6: memref<8x64xf32, #tpu.memory_space<vmem>>, %arg7: memref<8x1xf32, #tpu.memory_space<vmem>>, %arg8: memref<4x8xf32, #tpu.memory_space<vmem>>, %arg9: memref<4x1xf32, #tpu.memory_space<vmem>>, %arg10: memref<4x2xf32, #tpu.memory_space<vmem>>) attributes {dimension_semantics = [#tpu.dimension_semantics<parallel>], iteration_bounds = array<i64: 1>, scalar_prefetch = 0 : i64, scratch_operands = 0 : i64, tpu.core_type = #tpu.core_type<tc>, window_params = [{transform_indices = @transform_0, window_bounds = array<i64: 12, 2>}, {pipeline_mode = #tpu.pipeline_mode<synchronous>, transform_indices = @transform_1, window_bounds = array<i64: 64, 12>}, {pipeline_mode = #tpu.pipeline_mode<synchronous>, transform_indices = @transform_2, window_bounds = array<i64: 64, 1>}, {pipeline_mode = #tpu.pipeline_mode<synchronous>, transform_indices = @transform_3, window_bounds = array<i64: 64, 64>}, {pipeline_mode = #tpu.pipeline_mode<synchronous>, transform_indices = @transform_4, window_bounds = array<i64: 64, 1>}, {pipeline_mode = #tpu.pipeline_mode<synchronous>, transform_indices = @transform_5, window_bounds = array<i64: 8, 64>}, {pipeline_mode = #tpu.pipeline_mode<synchronous>, transform_indices = @transform_6, window_bounds = array<i64: 8, 1>}, {pipeline_mode = #tpu.pipeline_mode<synchronous>, transform_indices = @transform_7, window_bounds = array<i64: 4, 8>}, {pipeline_mode = #tpu.pipeline_mode<synchronous>, transform_indices = @transform_8, window_bounds = array<i64: 4, 1>}, {transform_indices = @transform_9, window_bounds = array<i64: 4, 2>}]} {
    %c0 = arith.constant 0 : index
    %c0_0 = arith.constant 0 : index
    %0 = vector.load %arg1[%c0, %c0_0] : memref<12x2xf32, #tpu.memory_space<vmem>>, vector<12x2xf32>
    %c0_1 = arith.constant 0 : index
    %c0_2 = arith.constant 0 : index
    %1 = vector.load %arg2[%c0_1, %c0_2] : memref<64x12xf32, #tpu.memory_space<vmem>>, vector<64x12xf32>
    %cst = arith.constant dense<0.000000e+00> : vector<64x2xf32>
    %2 = tpu.matmul %1, %0, %cst {dimension_numbers = #tpu.dot_dimension_numbers<[1], [0], [0], [1], [0, 0, 1, 1], [], []>} : vector<64x12xf32>, vector<12x2xf32>, vector<64x2xf32> -> vector<64x2xf32>
    %c0_3 = arith.constant 0 : index
    %c0_4 = arith.constant 0 : index
    %3 = vector.load %arg3[%c0_3, %c0_4] : memref<64x1xf32, #tpu.memory_space<vmem>>, vector<64x1xf32>
    %4 = vector.broadcast %3 : vector<64x1xf32> to vector<64x2xf32>
    %5 = arith.addf %2, %4 : vector<64x2xf32>
    %cst_5 = arith.constant 0.000000e+00 : f32
    %6 = vector.broadcast %cst_5 : f32 to vector<64x2xf32>
    %7 = arith.maximumf %5, %6 : vector<64x2xf32>
    %c0_6 = arith.constant 0 : index
    %c0_7 = arith.constant 0 : index
    %8 = vector.load %arg4[%c0_6, %c0_7] : memref<64x64xf32, #tpu.memory_space<vmem>>, vector<64x64xf32>
    %cst_8 = arith.constant dense<0.000000e+00> : vector<64x2xf32>
    %9 = tpu.matmul %8, %7, %cst_8 {dimension_numbers = #tpu.dot_dimension_numbers<[1], [0], [0], [1], [0, 0, 1, 1], [], []>} : vector<64x64xf32>, vector<64x2xf32>, vector<64x2xf32> -> vector<64x2xf32>
    %c0_9 = arith.constant 0 : index
    %c0_10 = arith.constant 0 : index
    %10 = vector.load %arg5[%c0_9, %c0_10] : memref<64x1xf32, #tpu.memory_space<vmem>>, vector<64x1xf32>
    %11 = vector.broadcast %10 : vector<64x1xf32> to vector<64x2xf32>
    %12 = arith.addf %9, %11 : vector<64x2xf32>
    %cst_11 = arith.constant 0.000000e+00 : f32
    %13 = vector.broadcast %cst_11 : f32 to vector<64x2xf32>
    %14 = arith.maximumf %12, %13 : vector<64x2xf32>
    %c0_12 = arith.constant 0 : index
    %c0_13 = arith.constant 0 : index
    %15 = vector.load %arg6[%c0_12, %c0_13] : memref<8x64xf32, #tpu.memory_space<vmem>>, vector<8x64xf32>
    %cst_14 = arith.constant dense<0.000000e+00> : vector<8x2xf32>
    %16 = tpu.matmul %15, %14, %cst_14 {dimension_numbers = #tpu.dot_dimension_numbers<[1], [0], [0], [1], [0, 0, 1, 1], [], []>} : vector<8x64xf32>, vector<64x2xf32>, vector<8x2xf32> -> vector<8x2xf32>
    %c0_15 = arith.constant 0 : index
    %c0_16 = arith.constant 0 : index
    %17 = vector.load %arg7[%c0_15, %c0_16] : memref<8x1xf32, #tpu.memory_space<vmem>>, vector<8x1xf32>
    %18 = vector.broadcast %17 : vector<8x1xf32> to vector<8x2xf32>
    %19 = arith.addf %16, %18 : vector<8x2xf32>
    %cst_17 = arith.constant 0.000000e+00 : f32
    %20 = vector.broadcast %cst_17 : f32 to vector<8x2xf32>
    %21 = arith.maximumf %19, %20 : vector<8x2xf32>
    %c0_18 = arith.constant 0 : index
    %c0_19 = arith.constant 0 : index
    %22 = vector.load %arg8[%c0_18, %c0_19] : memref<4x8xf32, #tpu.memory_space<vmem>>, vector<4x8xf32>
    %cst_20 = arith.constant dense<0.000000e+00> : vector<4x2xf32>
    %23 = tpu.matmul %22, %21, %cst_20 {dimension_numbers = #tpu.dot_dimension_numbers<[1], [0], [0], [1], [0, 0, 1, 1], [], []>} : vector<4x8xf32>, vector<8x2xf32>, vector<4x2xf32> -> vector<4x2xf32>
    %c0_21 = arith.constant 0 : index
    %c0_22 = arith.constant 0 : index
    %24 = vector.load %arg9[%c0_21, %c0_22] : memref<4x1xf32, #tpu.memory_space<vmem>>, vector<4x1xf32>
    %25 = vector.broadcast %24 : vector<4x1xf32> to vector<4x2xf32>
    %26 = arith.addf %23, %25 : vector<4x2xf32>
    %c0_23 = arith.constant 0 : index
    %c0_24 = arith.constant 0 : index
    %27 = vector.load %arg10[%c0_23, %c0_24] : memref<4x2xf32, #tpu.memory_space<vmem>>, vector<4x2xf32>
    tpu.vector_store %arg10[%c0_23, %c0_24], %26 {strides = array<i32>} : memref<4x2xf32, #tpu.memory_space<vmem>>, vector<4x2xf32>,
    return
  }
  func.func @transform_0(%arg0: i32) -> (i32, i32) {
    %c0_i32 = arith.constant 0 : i32
    %c0_i32_0 = arith.constant 0 : i32
    return %c0_i32, %arg0 : i32, i32
  }
  func.func @transform_1(%arg0: i32) -> (i32, i32) {
    %c0_i32 = arith.constant 0 : i32
    %c0_i32_0 = arith.constant 0 : i32
    %c0_i32_1 = arith.constant 0 : i32
    return %c0_i32, %c0_i32_0 : i32, i32
  }
  func.func @transform_2(%arg0: i32) -> (i32, i32) {
    %c0_i32 = arith.constant 0 : i32
    %c0_i32_0 = arith.constant 0 : i32
    %c0_i32_1 = arith.constant 0 : i32
    return %c0_i32, %c0_i32_0 : i32, i32
  }
  func.func @transform_3(%arg0: i32) -> (i32, i32) {
    %c0_i32 = arith.constant 0 : i32
    %c0_i32_0 = arith.constant 0 : i32
    %c0_i32_1 = arith.constant 0 : i32
    return %c0_i32, %c0_i32_0 : i32, i32
  }
  func.func @transform_4(%arg0: i32) -> (i32, i32) {
    %c0_i32 = arith.constant 0 : i32
    %c0_i32_0 = arith.constant 0 : i32
    %c0_i32_1 = arith.constant 0 : i32
    return %c0_i32, %c0_i32_0 : i32, i32
  }
  func.func @transform_5(%arg0: i32) -> (i32, i32) {
    %c0_i32 = arith.constant 0 : i32
    %c0_i32_0 = arith.constant 0 : i32
    %c0_i32_1 = arith.constant 0 : i32
    return %c0_i32, %c0_i32_0 : i32, i32
  }
  func.func @transform_6(%arg0: i32) -> (i32, i32) {
    %c0_i32 = arith.constant 0 : i32
    %c0_i32_0 = arith.constant 0 : i32
    %c0_i32_1 = arith.constant 0 : i32
    return %c0_i32, %c0_i32_0 : i32, i32
  }
  func.func @transform_7(%arg0: i32) -> (i32, i32) {
    %c0_i32 = arith.constant 0 : i32
    %c0_i32_0 = arith.constant 0 : i32
    %c0_i32_1 = arith.constant 0 : i32
    return %c0_i32, %c0_i32_0 : i32, i32
  }
  func.func @transform_8(%arg0: i32) -> (i32, i32) {
    %c0_i32 = arith.constant 0 : i32
    %c0_i32_0 = arith.constant 0 : i32
    %c0_i32_1 = arith.constant 0 : i32
    return %c0_i32, %c0_i32_0 : i32, i32
  }
  func.func @transform_9(%arg0: i32) -> (i32, i32) {
    %c0_i32 = arith.constant 0 : i32
    %c0_i32_0 = arith.constant 0 : i32
    return %c0_i32, %arg0 : i32, i32
  }
}

</mosaic_0001>

<bundles_post_ra>
// kernel: delta_q_forward.1
= control target key start
LH: loop header
LB: loop body
LE: loop exit
PB: predicated region body
PF: predicated region fallthrough
CT: control target
= control target key end

     0   :  { %vm115_vm0 = vcmask 1043456   ;;  %vm90_vm1 = vcmask 97280   ;;  %vm759_vm2 = vmmov 1   ;;  %v760_v2 = vmov 0   ;;  %s950_s0 = inlined_call_operand.vmem [shape: f32[12,2], index: 0, kind: input, shape index: {}]   ;;  %s951_s1 = inlined_call_operand.vmem [shape: f32[64,12], index: 1, kind: input, shape index: {}]   ;;  %s952_s2 = inlined_call_operand.vmem [shape: f32[64,1], index: 2, kind: input, shape index: {}]   ;;  %s953_s4 = inlined_call_operand.vmem [shape: f32[64,1], index: 4, kind: input, shape index: {}]   ;;  %s954_s6 = inlined_call_operand.vmem [shape: f32[8,1], index: 6, kind: input, shape index: {}]   ;;  %s955_s8 = inlined_call_operand.vmem [shape: f32[4,1], index: 8, kind: input, shape index: {}]   ;;  %s956_s3 = inlined_call_operand.vmem [shape: f32[64,64], index: 3, kind: input, shape index: {}]   ;;  %s957_s5 = inlined_call_operand.vmem [shape: f32[8,64], index: 5, kind: input, shape index: {}]   ;;  %s958_s7 = inlined_call_operand.vmem [shape: f32[4,8], index: 7, kind: input, shape index: {}]   ;;  %s959_s9 = inlined_call_operand.vmem [shape: f32[4,2], index: 9, kind: output, shape index: {}]  }
   0x1   :  { %v32_v0 = vld [vmem:[%s950_s0] sm:$0xff]  ;;  %v33_v1 = vld [vmem:[%s950_s0 + $0x8] sm:$0xf]  ;;  %vm719_vm3 = vmpackc.low %vm115_vm0, %vm759_vm2  ;;  %757 = vset.pattern.permute.xlu0 %v760_v2  ;;  %758 = vset.pattern.permute.xlu1 %v760_v2  ;;  %vm288_vm4 = vcmask 523264   ;;  %vm762_vm5 = vmmov 0   ;;  %vm514_vm6 = vcmask 64512  }
   0x2   :  { %v718_v3 = vpack.c.bf16 %v33_v1, %v32_v0  ;;  %v34_v4 = vld [vmem:[%s951_s1] sm:$0xff]  ;;  %v35_v6 = vld [vmem:[%s951_s1 + $0x8] sm:$0xff]  ;;  %v44_v7 = vld [vmem:[%s952_s2 + $0x10] sm:$0xff]  ;;  %vm588_vm7 = vcmask 11264  }
   0x3   :  { %654 = vmatprep.mubr.msk.f32.mxu0 %vm90_vm1, %v34_v4  ;;  %v42_v5 = vld [vmem:[%s952_s2] sm:$0xff]  ;;  %v36_v8 = vld [vmem:[%s951_s1 + $0x10] sm:$0xff]  ;;  %62 = vperm.xlu1 %758, %v44_v7   ;;  %v43_v9 = vld [vmem:[%s952_s2 + $0x8] sm:$0xff] }
   0x4   :  { %720 = vmatprep.subr.msk.bf16.mxu0 %vm719_vm3, %v718_v3  ;;  %52 = vperm.xlu0 %757, %v42_v5   ;;  %v45_v10 = vld [vmem:[%s952_s2 + $0x18] sm:$0xff]  ;;  %v38_v12 = vld [vmem:[%s951_s1 + $0x20] sm:$0xff]  ;;  %v47_v14 = vld [vmem:[%s952_s2 + $0x28] sm:$0xff] }
   0x5   :  { %723 = vmatpush3.bf16.msk.msra.mxu0 %vm719_vm3, %v718_v3  ;;  %v37_v11 = vld [vmem:[%s951_s1 + $0x18] sm:$0xff]  ;;  %v46_v13 = vld [vmem:[%s952_s2 + $0x20] sm:$0xff]  ;;  %v39_v15 = vld [vmem:[%s951_s1 + $0x28] sm:$0xff] }
   0x6   :  { %v40_v16 = vld [vmem:[%s951_s1 + $0x30] sm:$0xff]  ;;  %v49_v18 = vld [vmem:[%s952_s2 + $0x38] sm:$0xff]  ;;  %v240_v20 = vld [vmem:[%s953_s4] sm:$0xff] }
   0x7   :  { %67 = vperm.xlu1 %758, %v45_v10   ;;  %v48_v17 = vld [vmem:[%s952_s2 + $0x30] sm:$0xff]  ;;  %v41_v19 = vld [vmem:[%s951_s1 + $0x38] sm:$0xff]  ;;  %v241_v21 = vld [vmem:[%s953_s4 + $0x8] sm:$0xff]  ;;  %v761_v10 = vmov 0.0|0.0  }
   0x8   :  { %655 = vmatmul.mubr.msk.f32.vlgmr.msra.gmra.mrb[0].mxu0 %vm90_vm1, %v35_v6  ;;  %57 = vperm.xlu0 %757, %v43_v9   ;;  %v242_v22 = vld [vmem:[%s953_s4 + $0x10] sm:$0xff]  ;;  %v243_v23 = vld [vmem:[%s953_s4 + $0x18] sm:$0xff]  ;;  %v244_v24 = vld [vmem:[%s953_s4 + $0x20] sm:$0xff] }
   0x9   :  { %657 = vmatprep.mubr.msk.f32.mxu0 %vm90_vm1, %v36_v8  ;;  %v245_v25 = vld [vmem:[%s953_s4 + $0x28] sm:$0xff]  ;;  %v246_v26 = vld [vmem:[%s953_s4 + $0x30] sm:$0xff]  ;;  %v247_v27 = vld [vmem:[%s953_s4 + $0x38] sm:$0xff]  ;;  %740 = vmatprep.subr.bf16.mxu0 %v761_v10 }
   0xa   :  { %v427_v28 = vld [vmem:[%s954_s6] sm:$0xff]  ;;  %v233_v3 = vld [vmem:[%s956_s3 + $0x8] sm:$0xff]  ;;  %v234_v4 = vld [vmem:[%s956_s3 + $0x10] sm:$0xff] }
   0xb   :  { %77 = vperm.xlu1 %758, %v47_v14   ;;  %v508_v29 = vld [vmem:[%s955_s8] sm:$0xf]  ;;  %v235_v5 = vld [vmem:[%s956_s3 + $0x18] sm:$0xff]  ;;  %v237_v7 = vld [vmem:[%s956_s3 + $0x28] sm:$0xff] }
   0xc   :  { %658 = vmatmul.mubr.msk.f32.gmra.mrb[2].mxu0 %vm90_vm1, %v37_v11  ;;  %72 = vperm.xlu0 %757, %v46_v13   ;;  %v232_v30 = vld [vmem:[%s956_s3] sm:$0xff]  ;;  %v238_v8 = vld [vmem:[%s956_s3 + $0x30] sm:$0xff]  ;;  %v239_v9 = vld [vmem:[%s956_s3 + $0x38] sm:$0xff]  ;;  %v763_v11 = vmov 0.0  }
   0xd   :  { %660 = vmatprep.mubr.msk.f32.mxu0 %vm90_vm1, %v38_v12  ;;  %682 = vmatprep.mubr.msk.f32.mxu1 %vm288_vm4, %v232_v30  ;;  %v236_v6 = vld [vmem:[%s956_s3 + $0x20] sm:$0xff] }
   0xf   :  { %87 = vperm.xlu1 %758, %v49_v18  }
  0x10   :  { %661 = vmatmul.mubr.msk.f32.gmra.mrb[4].mxu0 %vm90_vm1, %v39_v15  ;;  %82 = vperm.xlu0 %757, %v48_v17  }
  0x11   :  { %663 = vmatprep.mubr.msk.f32.mxu0 %vm90_vm1, %v40_v16 }
  0x13   :  { %255 = vperm.xlu1 %758, %v241_v21  }
  0x14   :  { %664 = vmatmul.mubr.msk.f32.gmra.mrb[6].mxu0 %vm90_vm1, %v41_v19  ;;  %250 = vperm.xlu0 %757, %v240_v20  }
  0x15   :  { %710 = vmatprep.mubr.msk.f32.mxu0 %vm762_vm5, %v763_v11 }
  0x17   :  { %265 = vperm.xlu1 %758, %v243_v23  }
  0x18   :  { %260 = vperm.xlu0 %757, %v242_v22  }
  0x1b   :  { %275 = vperm.xlu1 %758, %v245_v25  }
  0x1c   :  { %270 = vperm.xlu0 %757, %v244_v24  }
  0x1f   :  { %285 = vperm.xlu1 %758, %v247_v27  }
  0x20   :  { %280 = vperm.xlu0 %757, %v246_v26  }
  0x23   :  { %511 = vperm.xlu1 %758, %v508_v29  }
  0x24   :  { %430 = vperm.xlu0 %757, %v427_v28  }
  0x82   :  { %v63_v32 = vpop.permute.xlu1 %62 }
  0x83   :  { %v53_v31 = vpop.permute.xlu0 %52 }
  0x86   :  { %v68_v34 = vpop.permute.xlu1 %67 }
  0x87   :  { %v58_v33 = vpop.permute.xlu0 %57 }
  0x8a   :  { %v78_v44 = vpop.permute.xlu1 %77 }
  0x8b   :  { %v73_v47 = vpop.permute.xlu0 %72 }
  0x8e   :  { %v88_v56 = vpop.permute.xlu1 %87 }
  0x8f   :  { %v83_v59 = vpop.permute.xlu0 %82 }
  0x92   :  { %v256_v12 = vpop.permute.xlu1 %255 }
  0x93   :  { %v251_v13 = vpop.permute.xlu0 %250 }
  0x96   :  { %v266_v14 = vpop.permute.xlu1 %265 }
  0x97   :  { %v261_v16 = vpop.permute.xlu0 %260 }
  0x9a   :  { %v276_v25 = vpop.permute.xlu1 %275 }
  0x9b   :  { %v271_v28 = vpop.permute.xlu0 %270 }
  0xdb   :  { %v656_v35 = vpop.f32.mrb[0].mxu0 }
  0xdc   :  { %v191_v36 = vadd.f32 %v656_v35, %v58_v33  ;;  %v185_v37 = vpop.f32.mrb[1].mxu0 }
  0xdd   :  { %v186_v38 = vadd.f32 %v185_v37, %v53_v31  ;;  %v286_v37 = vpop.permute.xlu1 %285 }
  0xde   :  { %v225_v39 = vmax.f32 %v191_v36, 0.0 }
  0xdf   :  { %v224_v40 = vmax.f32 %v186_v38, 0.0  ;;  %v659_v41 = vpop.f32.mrb[2].mxu0 }
  0xe0   :  { %v201_v42 = vadd.f32 %v659_v41, %v68_v34  ;;  %v195_v43 = vpop.f32.mrb[3].mxu0 }
  0xe1   :  { %v196_v45 = vadd.f32 %v195_v43, %v63_v32  ;;  %v724_v46 = vpack.c.bf16 %v225_v39, %v224_v40  ;;  %v281_v40 = vpop.permute.xlu0 %280 }
  0xe2   :  { %v227_v48 = vmax.f32 %v201_v42, 0.0 }
  0xe3   :  { %v226_v49 = vmax.f32 %v196_v45, 0.0  ;;  %v662_v50 = vpop.f32.mrb[4].mxu0  ;;  %725 = vmatprep.subr.bf16.mxu1 %v724_v46 }
  0xe4   :  { %v211_v51 = vadd.f32 %v662_v50, %v78_v44  ;;  %v205_v52 = vpop.f32.mrb[5].mxu0  ;;  %727 = vmatpush3.bf16.msra.mxu1 %v724_v46 }
  0xe5   :  { %v728_v53 = vpack.c.bf16 %v227_v48, %v226_v49  ;;  %v206_v54 = vadd.f32 %v205_v52, %v73_v47  ;;  %v426_v48 = vld [vmem:[%s957_s5] sm:$0xff]  ;;  %v431_v49 = vpop.permute.xlu0 %430 }
  0xe6   :  { %v229_v55 = vmax.f32 %v211_v51, 0.0 }
  0xe7   :  { %v228_v57 = vmax.f32 %v206_v54, 0.0  ;;  %v665_v58 = vpop.f32.mrb[6].mxu0  ;;  %729 = vmatprep.subr.bf16.mxu1 %v728_v53  ;;  %v507_v54 = vld [vmem:[%s958_s7] sm:$0xf] }
  0xe8   :  { %v221_v60 = vadd.f32 %v665_v58, %v88_v56  ;;  %v215_v61 = vpop.f32.mrb[7].mxu0  ;;  %731 = vmatpush3.bf16.msra.mxu1 %v728_v53 }
  0xe9   :  { %v732_v62 = vpack.c.bf16 %v229_v55, %v228_v57  ;;  %v216_v63 = vadd.f32 %v215_v61, %v83_v59  ;;  %v512_v55 = vpop.permute.xlu1 %511 }
  0xea   :  { %v231_v0 = vmax.f32 %v221_v60, 0.0 }
  0xeb   :  { %v230_v1 = vmax.f32 %v216_v63, 0.0  ;;  %733 = vmatprep.subr.bf16.mxu1 %v732_v62 }
  0xec   :  { %735 = vmatpush3.bf16.msra.mxu1 %v732_v62 }
  0xed   :  { %v736_v2 = vpack.c.bf16 %v231_v0, %v230_v1 }
  0xef   :  { %737 = vmatprep.subr.bf16.mxu1 %v736_v2 }
  0xf0   :  { %739 = vmatpush3.bf16.msra.mxu1 %v736_v2 }
  0xf3   :  { %683 = vmatmul.mubr.msk.f32.vlgmr.msra.gmra.mrb[0].mxu1 %vm288_vm4, %v233_v3 }
  0xf4   :  { %685 = vmatprep.mubr.msk.f32.mxu1 %vm288_vm4, %v234_v4 }
  0xf7   :  { %686 = vmatmul.mubr.msk.f32.gmra.mrb[2].mxu1 %vm288_vm4, %v235_v5 }
  0xf8   :  { %688 = vmatprep.mubr.msk.f32.mxu1 %vm288_vm4, %v236_v6 }
  0xfb   :  { %689 = vmatmul.mubr.msk.f32.gmra.mrb[4].mxu1 %vm288_vm4, %v237_v7 }
  0xfc   :  { %691 = vmatprep.mubr.msk.f32.mxu1 %vm288_vm4, %v238_v8 }
  0xff   :  { %692 = vmatmul.mubr.msk.f32.gmra.mrb[6].mxu1 %vm288_vm4, %v239_v9 }
 0x1c6   :  { %v684_v15 = vpop.f32.mrb[0].mxu1 }
 0x1c7   :  { %v385_v17 = vadd.f32 %v684_v15, %v256_v12  ;;  %v379_v18 = vpop.f32.mrb[1].mxu1 }
 0x1c8   :  { %v380_v19 = vadd.f32 %v379_v18, %v251_v13 }
 0x1c9   :  { %v419_v20 = vmax.f32 %v385_v17, 0.0 }
 0x1ca   :  { %v418_v21 = vmax.f32 %v380_v19, 0.0  ;;  %v687_v22 = vpop.f32.mrb[2].mxu1 }
 0x1cb   :  { %v395_v23 = vadd.f32 %v687_v22, %v266_v14  ;;  %v389_v24 = vpop.f32.mrb[3].mxu1 }
 0x1cc   :  { %v741_v26 = vpack.c.bf16 %v419_v20, %v418_v21  ;;  %v390_v27 = vadd.f32 %v389_v24, %v261_v16 }
 0x1cd   :  { %v421_v29 = vmax.f32 %v395_v23, 0.0 }
 0x1ce   :  { %v420_v30 = vmax.f32 %v390_v27, 0.0  ;;  %v690_v31 = vpop.f32.mrb[4].mxu1  ;;  %742 = vmatpush3.bf16.msra.mxu0 %v741_v26 }
 0x1cf   :  { %v405_v32 = vadd.f32 %v690_v31, %v276_v25  ;;  %v399_v33 = vpop.f32.mrb[5].mxu1  ;;  %743 = vmatprep.subr.bf16.mxu0 %v761_v10 }
 0x1d0   :  { %v744_v34 = vpack.c.bf16 %v421_v29, %v420_v30  ;;  %v400_v35 = vadd.f32 %v399_v33, %v271_v28 }
 0x1d1   :  { %v423_v36 = vmax.f32 %v405_v32, 0.0 }
 0x1d2   :  { %v422_v38 = vmax.f32 %v400_v35, 0.0  ;;  %v693_v39 = vpop.f32.mrb[6].mxu1  ;;  %745 = vmatpush3.bf16.msra.mxu0 %v744_v34 }
 0x1d3   :  { %v415_v41 = vadd.f32 %v693_v39, %v286_v37  ;;  %v409_v42 = vpop.f32.mrb[7].mxu1  ;;  %746 = vmatprep.subr.bf16.mxu0 %v761_v10 }
 0x1d4   :  { %v747_v43 = vpack.c.bf16 %v423_v36, %v422_v38  ;;  %v410_v44 = vadd.f32 %v409_v42, %v281_v40 }
 0x1d5   :  { %v425_v45 = vmax.f32 %v415_v41, 0.0 }
 0x1d6   :  { %v424_v46 = vmax.f32 %v410_v44, 0.0  ;;  %748 = vmatpush3.bf16.msra.mxu0 %v747_v43 }
 0x1d7   :  { %749 = vmatprep.subr.bf16.mxu0 %v761_v10 }
 0x1d8   :  { %v750_v47 = vpack.c.bf16 %v425_v45, %v424_v46 }
 0x1da   :  { %751 = vmatpush3.bf16.msra.mxu0 %v750_v47 }
 0x1db   :  { %713 = vmatprep.subr.mxu0 %v763_v11 }
 0x1dd   :  { %711 = vmatmul.mubr.msk.f32.vlgmr.msra.gmra.mrb[8].mxu0 %vm288_vm4, %v426_v48 }
 0x1de   :  { %715 = vmatprep.mubr.msk.f32.mxu0 %vm762_vm5, %v763_v11 }
 0x2b0   :  { %v502_v50 = vpop.f32.mrb[8].mxu0 }
 0x2b1   :  { %v503_v51 = vadd.f32 %v502_v50, %v431_v49  ;;  %v712_v52 = vpop.f32.mrb[9].mxu0 }
 0x2b3   :  { %v506_v53 = vmax.f32 %v503_v51, 0.0 }
 0x2b5   :  { %714 = vmatpush3.msra.mxu0 %v506_v53 }
 0x2b6   :  { %716 = vmatmul.mubr.msk.f32.vlgmr.msra.gmra.mrb[10].mxu0 %vm514_vm6, %v507_v54 }
 0x389   :  { %v584_v56 = vpop.f32.mrb[10].mxu0 }
 0x38a   :  { %v585_v57 = vadd.f32 %v584_v56, %v512_v55  ;;  %v717_v58 = vpop.f32.mrb[11].mxu0 }
 0x38c   :  { %589 = vst.msk [vmem:[%s959_s9] sm:$0xf] %vm588_vm7, %v585_v57 }

</bundles_post_ra>
